<compile_context>
chip_gen: v7x
topology: tpu7x:2x2x1
jax: 0.10.0
libtpu: 0.0.40
codegen_flags: <defaults>
</compile_context>

<pallas_src>
import functools

import jax
import jax.numpy as jnp
from jax.experimental import pallas as pl
from jax.experimental.pallas import tpu as pltpu


_H1 = 256          # fc1 out
_H2 = 128          # fc2 out
_A_PAD = 128       # fc3 out, padded to a full lane width for the MXU pass


def _qnet_kernel(x_ref, w1_ref, b1_ref, w2_ref, b2_ref, w3_ref, b3_ref, o_ref):
    # bf16 MXU matmuls with f32 accumulation; f32 bias + ReLU epilogues,
    # re-cast to bf16 right away to keep the live intermediates small.
    x = x_ref[...].astype(jnp.bfloat16)
    h1 = jnp.dot(x, w1_ref[...], preferred_element_type=jnp.float32)
    h1 = jnp.maximum(h1 + b1_ref[...], 0.0).astype(jnp.bfloat16)
    h2 = jnp.dot(h1, w2_ref[...], preferred_element_type=jnp.float32)
    h2 = jnp.maximum(h2 + b2_ref[...], 0.0).astype(jnp.bfloat16)
    out = jnp.dot(h2, w3_ref[...], preferred_element_type=jnp.float32)
    out = out + b3_ref[...]
    # Narrow to the true action_size in-kernel: the padded w3/b3 columns are
    # zero, and the store/writeback only touches action_size lanes per row.
    o_ref[...] = out[:, : o_ref.shape[-1]].astype(o_ref.dtype)


def _choose_tile_b(batch, block_b):
    """Batch tile: >= 2 grid steps (v7x megacore), sublane-aligned, <= block_b."""
    if batch <= 8:
        return batch
    half = -(-batch // 2)               # cdiv(batch, 2)
    tile = ((half + 7) // 8) * 8        # round up to a multiple of 8 sublanes
    return max(8, min(block_b, tile))


@functools.partial(jax.jit, static_argnames=("action_size", "block_b"))
def qnet_forward(state, w1, b1, w2, b2, w3, b3, *, action_size, block_b=256):
    """Fused QNet forward. state: [B, state_size] f32 -> [B, action_size] f32."""
    B, S = state.shape
    assert w3.shape[1] == _A_PAD

    tile_b = _choose_tile_b(B, block_b)
    grid = (pl.cdiv(B, tile_b),)

    # Constant block index every grid step -> weights/biases stay VMEM-resident.
    resident = lambda arr: pl.BlockSpec(arr.shape, lambda i: (0,) * arr.ndim)

    flops = 2 * B * (S * _H1 + _H1 * _H2 + _H2 * _A_PAD)
    bytes_accessed = (
        state.size * state.dtype.itemsize
        + sum(a.size * a.dtype.itemsize for a in (w1, b1, w2, b2, w3, b3))
        + B * action_size * 4
    )

    return pl.pallas_call(
        _qnet_kernel,
        out_shape=jax.ShapeDtypeStruct((B, action_size), jnp.float32),
        grid=grid,
        in_specs=[
            pl.BlockSpec((tile_b, S), lambda i: (i, 0)),   # activations: batch-tiled
            resident(w1), resident(b1),
            resident(w2), resident(b2),
            resident(w3), resident(b3),
        ],
        out_specs=pl.BlockSpec((tile_b, action_size), lambda i: (i, 0)),
        compiler_params=pltpu.CompilerParams(
            # Batch tiles are independent -> shard across TensorCores on v7x.
            dimension_semantics=("parallel",),
        ),
        cost_estimate=pl.CostEstimate(
            flops=flops, transcendentals=0, bytes_accessed=bytes_accessed),
    )(state, w1, b1, w2, b2, w3, b3)


def init_qnet_params(key, state_size, action_size):
    """Mirror nn.Linear's uniform(-1/sqrt(fan_in), +) init.

    Weights stored bf16 as [in, out] (transposed vs torch); biases f32 [1, out].
    fc3's output dim is zero-padded to _A_PAD lanes for the MXU pass; the padded
    columns are zero and the kernel never stores them.
    """
    def linear(key, fan_in, fan_out, pad_out=None):
        kw, kb = jax.random.split(key)
        bound = 1.0 / jnp.sqrt(jnp.float32(fan_in))
        w = jax.random.uniform(kw, (fan_in, fan_out), jnp.float32, -bound, bound)
        b = jax.random.uniform(kb, (1, fan_out), jnp.float32, -bound, bound)
        if pad_out is not None and pad_out > fan_out:
            w = jnp.pad(w, ((0, 0), (0, pad_out - fan_out)))
            b = jnp.pad(b, ((0, 0), (0, pad_out - fan_out)))
        return w.astype(jnp.bfloat16), b

    k1, k2, k3 = jax.random.split(key, 3)
    w1, b1 = linear(k1, state_size, _H1)
    w2, b2 = linear(k2, _H1, _H2)
    w3, b3 = linear(k3, _H2, action_size, pad_out=_A_PAD)
    return w1, b1, w2, b2, w3, b3


if __name__ == "__main__":
    key = jax.random.PRNGKey(0)
    k_params, k_state = jax.random.split(key)

    state_size = 32
    action_size = 8
    batch = 64  # small; still gives a 2-step grid (tile_b = 32)

    params = init_qnet_params(k_params, state_size, action_size)
    state = jax.random.normal(k_state, (batch, state_size), jnp.float32)

    q_values = qnet_forward(state, *params, action_size=action_size)
    jax.block_until_ready(q_values)

    # Reference with the same bf16-matmul / f32-accumulate math in plain JAX.
    w1, b1, w2, b2, w3, b3 = params
    xb = state.astype(jnp.bfloat16)
    h1 = jnp.maximum(
        jnp.dot(xb, w1, preferred_element_type=jnp.float32) + b1,
        0.0).astype(jnp.bfloat16)
    h2 = jnp.maximum(
        jnp.dot(h1, w2, preferred_element_type=jnp.float32) + b2,
        0.0).astype(jnp.bfloat16)
    ref = jnp.dot(h2, w3, preferred_element_type=jnp.float32) + b3
    ref = ref[:, :action_size]

    assert q_values.shape == (batch, action_size)
    assert jnp.allclose(q_values, ref, atol=2e-2, rtol=2e-2), float(
        jnp.max(jnp.abs(q_values - ref)))

    print("KERNEL_OK")
</pallas_src>

<mosaic_0001>
module attributes {stable_mosaic.version = 11 : i64} {
  func.func @_qnet_kernel(%arg0: i32, %arg1: memref<32x32xf32, #tpu.memory_space<vmem>>, %arg2: memref<32x256xbf16, #tpu.memory_space<vmem>>, %arg3: memref<1x256xf32, #tpu.memory_space<vmem>>, %arg4: memref<256x128xbf16, #tpu.memory_space<vmem>>, %arg5: memref<1x128xf32, #tpu.memory_space<vmem>>, %arg6: memref<128x128xbf16, #tpu.memory_space<vmem>>, %arg7: memref<1x128xf32, #tpu.memory_space<vmem>>, %arg8: memref<32x8xf32, #tpu.memory_space<vmem>>) attributes {dimension_semantics = [#tpu.dimension_semantics<parallel>], iteration_bounds = array<i64: 2>, scalar_prefetch = 0 : i64, scratch_operands = 0 : i64, tpu.core_type = #tpu.core_type<tc>, window_params = [{transform_indices = @transform_0, window_bounds = array<i64: 32, 32>}, {pipeline_mode = #tpu.pipeline_mode<synchronous>, transform_indices = @transform_1, window_bounds = array<i64: 32, 256>}, {pipeline_mode = #tpu.pipeline_mode<synchronous>, transform_indices = @transform_2, window_bounds = array<i64: 1, 256>}, {pipeline_mode = #tpu.pipeline_mode<synchronous>, transform_indices = @transform_3, window_bounds = array<i64: 256, 128>}, {pipeline_mode = #tpu.pipeline_mode<synchronous>, transform_indices = @transform_4, window_bounds = array<i64: 1, 128>}, {pipeline_mode = #tpu.pipeline_mode<synchronous>, transform_indices = @transform_5, window_bounds = array<i64: 128, 128>}, {pipeline_mode = #tpu.pipeline_mode<synchronous>, transform_indices = @transform_6, window_bounds = array<i64: 1, 128>}, {transform_indices = @transform_7, window_bounds = array<i64: 32, 8>}]} {
    %c0 = arith.constant 0 : index
    %c0_0 = arith.constant 0 : index
    %0 = vector.load %arg1[%c0, %c0_0] : memref<32x32xf32, #tpu.memory_space<vmem>>, vector<32x32xf32>
    %1 = arith.truncf %0 : vector<32x32xf32> to vector<32x32xbf16>
    %c0_1 = arith.constant 0 : index
    %c0_2 = arith.constant 0 : index
    %2 = vector.load %arg2[%c0_1, %c0_2] : memref<32x256xbf16, #tpu.memory_space<vmem>>, vector<32x256xbf16>
    %cst = arith.constant dense<0.000000e+00> : vector<32x256xf32>
    %3 = tpu.matmul %1, %2, %cst {dimension_numbers = #tpu.dot_dimension_numbers<[1], [0], [0], [1], [0, 0, 1, 1], [], []>} : vector<32x32xbf16>, vector<32x256xbf16>, vector<32x256xf32> -> vector<32x256xf32>
    %c0_3 = arith.constant 0 : index
    %c0_4 = arith.constant 0 : index
    %4 = vector.load %arg3[%c0_3, %c0_4] : memref<1x256xf32, #tpu.memory_space<vmem>>, vector<1x256xf32>
    %5 = vector.broadcast %4 : vector<1x256xf32> to vector<32x256xf32>
    %6 = arith.addf %3, %5 : vector<32x256xf32>
    %cst_5 = arith.constant 0.000000e+00 : f32
    %7 = vector.broadcast %cst_5 : f32 to vector<32x256xf32>
    %8 = arith.maximumf %6, %7 : vector<32x256xf32>
    %9 = arith.truncf %8 : vector<32x256xf32> to vector<32x256xbf16>
    %c0_6 = arith.constant 0 : index
    %c0_7 = arith.constant 0 : index
    %10 = vector.load %arg4[%c0_6, %c0_7] : memref<256x128xbf16, #tpu.memory_space<vmem>>, vector<256x128xbf16>
    %cst_8 = arith.constant dense<0.000000e+00> : vector<32x128xf32>
    %11 = tpu.matmul %9, %10, %cst_8 {dimension_numbers = #tpu.dot_dimension_numbers<[1], [0], [0], [1], [0, 0, 1, 1], [], []>} : vector<32x256xbf16>, vector<256x128xbf16>, vector<32x128xf32> -> vector<32x128xf32>
    %c0_9 = arith.constant 0 : index
    %c0_10 = arith.constant 0 : index
    %12 = vector.load %arg5[%c0_9, %c0_10] : memref<1x128xf32, #tpu.memory_space<vmem>>, vector<1x128xf32>
    %13 = vector.broadcast %12 : vector<1x128xf32> to vector<32x128xf32>
    %14 = arith.addf %11, %13 : vector<32x128xf32>
    %cst_11 = arith.constant 0.000000e+00 : f32
    %15 = vector.broadcast %cst_11 : f32 to vector<32x128xf32>
    %16 = arith.maximumf %14, %15 : vector<32x128xf32>
    %17 = arith.truncf %16 : vector<32x128xf32> to vector<32x128xbf16>
    %c0_12 = arith.constant 0 : index
    %c0_13 = arith.constant 0 : index
    %18 = vector.load %arg6[%c0_12, %c0_13] : memref<128x128xbf16, #tpu.memory_space<vmem>>, vector<128x128xbf16>
    %cst_14 = arith.constant dense<0.000000e+00> : vector<32x128xf32>
    %19 = tpu.matmul %17, %18, %cst_14 {dimension_numbers = #tpu.dot_dimension_numbers<[1], [0], [0], [1], [0, 0, 1, 1], [], []>} : vector<32x128xbf16>, vector<128x128xbf16>, vector<32x128xf32> -> vector<32x128xf32>
    %c0_15 = arith.constant 0 : index
    %c0_16 = arith.constant 0 : index
    %20 = vector.load %arg7[%c0_15, %c0_16] : memref<1x128xf32, #tpu.memory_space<vmem>>, vector<1x128xf32>
    %21 = vector.broadcast %20 : vector<1x128xf32> to vector<32x128xf32>
    %22 = arith.addf %19, %21 : vector<32x128xf32>
    %23 = vector.extract_strided_slice %22 {offsets = [0, 0], sizes = [32, 8], strides = [1, 1]} : vector<32x128xf32> to vector<32x8xf32>
    %c0_17 = arith.constant 0 : index
    %c0_18 = arith.constant 0 : index
    %24 = vector.load %arg8[%c0_17, %c0_18] : memref<32x8xf32, #tpu.memory_space<vmem>>, vector<32x8xf32>
    tpu.vector_store %arg8[%c0_17, %c0_18], %23 {strides = array<i32>} : memref<32x8xf32, #tpu.memory_space<vmem>>, vector<32x8xf32>,
    return
  }
  func.func @transform_0(%arg0: i32) -> (i32, i32) {
    %c0_i32 = arith.constant 0 : i32
    %c0_i32_0 = arith.constant 0 : i32
    return %arg0, %c0_i32 : i32, i32
  }
  func.func @transform_1(%arg0: i32) -> (i32, i32) {
    %c0_i32 = arith.constant 0 : i32
    %c0_i32_0 = arith.constant 0 : i32
    %c0_i32_1 = arith.constant 0 : i32
    return %c0_i32, %c0_i32_0 : i32, i32
  }
  func.func @transform_2(%arg0: i32) -> (i32, i32) {
    %c0_i32 = arith.constant 0 : i32
    %c0_i32_0 = arith.constant 0 : i32
    %c0_i32_1 = arith.constant 0 : i32
    return %c0_i32, %c0_i32_0 : i32, i32
  }
  func.func @transform_3(%arg0: i32) -> (i32, i32) {
    %c0_i32 = arith.constant 0 : i32
    %c0_i32_0 = arith.constant 0 : i32
    %c0_i32_1 = arith.constant 0 : i32
    return %c0_i32, %c0_i32_0 : i32, i32
  }
  func.func @transform_4(%arg0: i32) -> (i32, i32) {
    %c0_i32 = arith.constant 0 : i32
    %c0_i32_0 = arith.constant 0 : i32
    %c0_i32_1 = arith.constant 0 : i32
    return %c0_i32, %c0_i32_0 : i32, i32
  }
  func.func @transform_5(%arg0: i32) -> (i32, i32) {
    %c0_i32 = arith.constant 0 : i32
    %c0_i32_0 = arith.constant 0 : i32
    %c0_i32_1 = arith.constant 0 : i32
    return %c0_i32, %c0_i32_0 : i32, i32
  }
  func.func @transform_6(%arg0: i32) -> (i32, i32) {
    %c0_i32 = arith.constant 0 : i32
    %c0_i32_0 = arith.constant 0 : i32
    %c0_i32_1 = arith.constant 0 : i32
    return %c0_i32, %c0_i32_0 : i32, i32
  }
  func.func @transform_7(%arg0: i32) -> (i32, i32) {
    %c0_i32 = arith.constant 0 : i32
    %c0_i32_0 = arith.constant 0 : i32
    return %arg0, %c0_i32 : i32, i32
  }
}

</mosaic_0001>

<bundles_post_ra>
// kernel: qnet_forward.1
= control target key start
LH: loop header
LB: loop body
LE: loop exit
PB: predicated region body
PF: predicated region fallthrough
CT: control target
= control target key end

     0   :  { %12 = vsyncpa [#allocation3], 0  ;;  %s1034_s24 = smov 0   ;;  %s1147_s0 = inlined_call_operand.vmem [shape: f32[64,32], index: 0, kind: input, shape index: {}]   ;;  %s1148_s1 = inlined_call_operand.vmem [shape: bf16[32,256], index: 1, kind: input, shape index: {}]   ;;  %s1149_s2 = inlined_call_operand.vmem [shape: f32[1,256], index: 2, kind: input, shape index: {}]   ;;  %s1150_s3 = inlined_call_operand.hbm [shape: bf16[256,128], index: 3, kind: input, shape index: {}]   ;;  %s1151_s4 = inlined_call_operand.vmem [shape: f32[1,128], index: 4, kind: input, shape index: {}]   ;;  %s1152_s5 = inlined_call_operand.vmem [shape: bf16[128,128], index: 5, kind: input, shape index: {}]   ;;  %s1153_s6 = inlined_call_operand.vmem [shape: f32[1,128], index: 6, kind: input, shape index: {}]   ;;  %s1154_s7 = inlined_call_operand.vmem [shape: f32[64,8], index: 7, kind: output, shape index: {}]  }
   0x1 LB: > { %s795_s25 = sadd.s32 4294967295, %s988_s24   ;;  %p797_p0 = scmp.ge.s32.totalorder %s988_s24, 1  ;;  %s988_s24 = sphi %s1034_s24, %s18_s24  }
   0x2   : > { %p201_p1 = scmp.lt.s32.totalorder %s988_s24, 3  ;;  %s990_s26 = smov [#allocation2]  }
   0x3   : > { %s219_s27 = sshll.u32 %s990_s26, 4  ;;  %p1048_p3 = scmp.eq.s32.totalorder %s795_s25, 0  ;;  %s220_s27 = int_to_ptr.vmem [resolvable:$true] %s219_s27 }
   0x4   : > { %p1042_p2 = pnand %p797_p0, %p201_p1  ;;  %s950_s10 = scalar_lea.hbm %s1150_s3, 2048 }
   0x5   : > { %s1159_s29 = scalar_select %p1048_p3, 1, 0 }
   0x6   : > { %s1158_s28 = scalar_select %p1042_p2, 1, 0 }
   0x7   : > { %p902_p4 = pneg %p1042_p2  ;;  %p951_p6 = scmp.ne.s32.totalorder %s1150_s3, %s950_s10 }
   0x8   : > { %p957_p10 = scmp.lt.u32.totalorder %s950_s10, %s1150_s3 }
   0x9   : > { %p1056_p5 = pnand %p1048_p3, %p902_p4 }
   0xb   : > { %p952_p7 = pneg %p1056_p5 }
   0xd   : > { %p953_p8 = pnand %p952_p7, %p951_p6 }
   0xf   : > { %p954_p9 = pneg %p953_p8 }
  0x11   : > { %p959_p11 = pnand %p957_p10, %p954_p9 }
  0x13   : > { %962 = shalt.err (!%p959_p11)
}
  0x14   : > { %s963_s15 = scalar_lea.vmem %s220_s27, 2048  ;;  %p971_p1 = scmp.lt.s32.totalorder %s220_s27, %s220_s27 }
  0x15   : > { %p964_p12 = scmp.ne.s32.totalorder %s220_s27, %s963_s15  ;;  %p972_p4 = scmp.lt.s32.totalorder %s963_s15, %s963_s15 }
  0x17   : > { %p966_p13 = pnand %p964_p12, %p952_p7  ;;  %p973_p3 = por %p972_p4, %p971_p1 }
  0x19   : > { %p967_p0 = pneg %p966_p13 }
  0x1b   : > { %p974_p2 = pnand %p973_p3, %p967_p0 }
  0x1d   : > { %977 = shalt.err (!%p974_p2)
}
  0x1e   : > { %s991_s16 = smov 64   ;;  %s992_s17 = smov 4  }
  0x1f   : > { %905 = dma.hbm_to_vmem [thread:$0]  (!%p1056_p5), %s1150_s3, 2048, %s220_s27, [#allocation3], %s991_s16, %s991_s16, %s992_s17  }
  0x20   : > { %p1161_p6 = scmp.ne.s32.totalorder %s1158_s28, 0 }
  0x21   : > { %p1162_p8 = scmp.ne.s32.totalorder (!%p1161_p6), %s1159_s29, 0 }
  0x22   : > { %253 = sbr.rel (%p1161_p6) target bundleno = 722 (0x2d2), region = 48 }
  0x29   : > { %983 = dma.done.wait (%p1162_p8), [#allocation3], 2048  }
  0x2a   : > { %985 = vsyncadd (%p1162_p8), [#allocation3], 4294965248  ;;  %s802_s20 = sshll.u32 %s795_s25, 2  ;;  %v993_v0 = vmov 0   ;;  %v920_v1 = vld [vmem:[%s1148_s1 + $0x4] ss:$8 sps:$4 sm:$0xff]   ;;  %v310_v30 = vlaneseq }
  0x2b   : > { %379 = vmatprep.mubr.bf16.mxu0 %v993_v0  ;;  %p286_p2 = scmp.lt.s32.totalorder %s802_s20, 7  ;;  %v922_v2 = vld [vmem:[%s1148_s1] ss:$8 sps:$4 sm:$0xff]   ;;  %347 = vmatprep.subr.bf16.mxu0 %v920_v1  ;;  %v923_v3 = vld [vmem:[%s1148_s1 + $0x14] ss:$8 sps:$4 sm:$0xff]   ;;  %vm340_vm0 = vcmask 261120  }
  0x2c   : > { %348 = vmatpush1.bf16.msra.mxu0 %v922_v2  ;;  %v925_v4 = vld [vmem:[%s1148_s1 + $0x10] ss:$8 sps:$4 sm:$0xff]   ;;  %v926_v7 = vld [vmem:[#allocation2 + $0x40] sm:$0xff]   ;;  %v928_v10 = vld [vmem:[#allocation2 + $0x48] sm:$0xff]   ;;  %v311_v31 = vshrl.u32 %v310_v30, 7  ;;  %vm722_vm1 = vcmask 64512  }
  0x2d   : > { %s1164_s20 = smov (!%p286_p2, %s802_s20), 7  ;;  %349 = vmatprep.subr.bf16.mxu0 %v923_v3  ;;  %v927_v8 = vld [vmem:[#allocation2] sm:$0xff]   ;;  %840 = vmatprep.subr.bf16.mxu1 %v926_v7  ;;  %v929_v11 = vld [vmem:[#allocation2 + $0x8] sm:$0xff]   ;;  %v930_v12 = vld [vmem:[#allocation2 + $0x50] sm:$0xff]  }
  0x2e   : > { %s803_s21 = sshll.u32 %s1164_s20, 3  ;;  %841 = vmatpush3.bf16.msra.mxu1 %v927_v8  ;;  %v931_v15 = vld [vmem:[#allocation2 + $0x10] sm:$0xff]   ;;  %v932_v16 = vld [vmem:[#allocation2 + $0x58] sm:$0xff]   ;;  %v934_v19 = vld [vmem:[#allocation2 + $0x60] sm:$0xff]   ;;  %v312_v32 = vsub.s32 0, %v311_v31  ;;  %v316_v34 = vsub.s32 1, %v311_v31 }
  0x2f   : > { %s289_s28 = scalar_lea.vmem %s1147_s0, %s803_s21  ;;  %842 = vmatprep.subr.bf16.mxu1 %v928_v10  ;;  %v933_v18 = vld [vmem:[#allocation2 + $0x18] sm:$0xff]   ;;  %v935_v20 = vld [vmem:[#allocation2 + $0x20] sm:$0xff]   ;;  %v936_v21 = vld [vmem:[#allocation2 + $0x68] sm:$0xff]   ;;  %s295_s15 = scalar_lea.vmem %s1154_s7, %s803_s21 }
  0x30   : > { %v298_v5 = vld [vmem:[%s289_s28] sm:$0xff]  ;;  %v299_v6 = vld [vmem:[%s289_s28 + $0x8] sm:$0xff]  ;;  %350 = vmatpush1.bf16.msra.mxu0 %v925_v4  ;;  %v300_v13 = vld [vmem:[%s289_s28 + $0x10] sm:$0xff] }
  0x31   : > { %v302_v9 = vpack.c.bf16 %v299_v6, %v298_v5  ;;  %v301_v14 = vld [vmem:[%s289_s28 + $0x18] sm:$0xff]  ;;  %v937_v22 = vld [vmem:[#allocation2 + $0x28] sm:$0xff]   ;;  %v938_v23 = vld [vmem:[#allocation2 + $0x70] sm:$0xff]  }
  0x32   : > { %843 = vmatpush3.bf16.msra.mxu1 %v929_v11  ;;  %v303_v17 = vpack.c.bf16 %v301_v14, %v300_v13  ;;  %v939_v24 = vld [vmem:[#allocation2 + $0x30] sm:$0xff]   ;;  %v940_v25 = vld [vmem:[#allocation2 + $0x78] sm:$0xff]   ;;  %v942_v27 = vld [vmem:[%s1152_s5] sm:$0xff]  }
  0x33   : > { %810 = vmatmul.mubr.msk.bf16.vlgmr.msra.gmra.mrb[0].mxu0 %vm340_vm0, %v302_v9  ;;  %844 = vmatprep.subr.bf16.mxu1 %v930_v12  ;;  %v941_v26 = vld [vmem:[#allocation2 + $0x38] sm:$0xff]   ;;  %v943_v28 = vld [vmem:[%s1152_s5 + $0x8] sm:$0xff]   ;;  %v944_v29 = vld [vmem:[%s1152_s5 + $0x10] sm:$0xff]  }
  0x34   : > { %389 = vmatprep.mubr.bf16.mxu0 %v993_v0  ;;  %878 = vmatprep.subr.bf16.mxu0 %v942_v27  ;;  %v308_v33 = vld [vmem:[%s1149_s2] sm:$0x3]  ;;  %v945_v1 = vld [vmem:[%s1152_s5 + $0x18] sm:$0xff]   ;;  %v947_v3 = vld [vmem:[%s1152_s5 + $0x28] sm:$0xff]  }
  0x35   : > { %879 = vmatpush3.bf16.msra.mxu0 %v942_v27  ;;  %v313_v35 = vrot.slane %v308_v33, %v312_v32  ;;  %v317_v36 = vrot.slane %v308_v33, %v316_v34  ;;  %v946_v2 = vld [vmem:[%s1152_s5 + $0x20] sm:$0xff]   ;;  %v948_v4 = vld [vmem:[%s1152_s5 + $0x30] sm:$0xff]   ;;  %v949_v5 = vld [vmem:[%s1152_s5 + $0x38] sm:$0xff]  }
  0x36   : > { %845 = vmatpush3.bf16.msra.mxu1 %v931_v15  ;;  %880 = vmatprep.subr.bf16.mxu0 %v943_v28  ;;  %v812_v7 = vld [vmem:[%s1151_s4] ss:$0 sm:$0xff] }
  0x37   : > { %846 = vmatprep.subr.bf16.mxu1 %v932_v16 }
  0x39   : > { %881 = vmatpush3.bf16.msra.mxu0 %v943_v28 }
  0x3a   : > { %847 = vmatpush3.bf16.msra.mxu1 %v933_v18  ;;  %882 = vmatprep.subr.bf16.mxu0 %v944_v29 }
  0x3b   : > { %811 = vmatmul.mubr.msk.bf16.gmra.mrb[4].mxu0 %vm340_vm0, %v303_v17  ;;  %848 = vmatprep.subr.bf16.mxu1 %v934_v19 }
  0x3d   : > { %883 = vmatpush3.bf16.msra.mxu0 %v944_v29  ;;  %v829_v29 = vld [vmem:[%s1153_s6] ss:$0 sm:$0xff] }
  0x3e   : > { %849 = vmatpush3.bf16.msra.mxu1 %v935_v20  ;;  %884 = vmatprep.subr.bf16.mxu0 %v945_v1 }
  0x3f   : > { %850 = vmatprep.subr.bf16.mxu1 %v936_v21 }
  0x41   : > { %885 = vmatpush3.bf16.msra.mxu0 %v945_v1 }
  0x42   : > { %851 = vmatpush3.bf16.msra.mxu1 %v937_v22  ;;  %886 = vmatprep.subr.bf16.mxu0 %v946_v2 }
  0x43   : > { %852 = vmatprep.subr.bf16.mxu1 %v938_v23 }
  0x45   : > { %887 = vmatpush3.bf16.msra.mxu0 %v946_v2 }
  0x46   : > { %853 = vmatpush3.bf16.msra.mxu1 %v939_v24  ;;  %888 = vmatprep.subr.bf16.mxu0 %v947_v3 }
  0x47   : > { %854 = vmatprep.subr.bf16.mxu1 %v940_v25 }
  0x49   : > { %889 = vmatpush3.bf16.msra.mxu0 %v947_v3 }
  0x4a   : > { %855 = vmatpush3.bf16.msra.mxu1 %v941_v26  ;;  %890 = vmatprep.subr.bf16.mxu0 %v948_v4 }
  0x4d   : > { %891 = vmatpush3.bf16.msra.mxu0 %v948_v4 }
  0x4e   : > { %892 = vmatprep.subr.bf16.mxu0 %v949_v5 }
  0x51   : > { %893 = vmatpush3.bf16.msra.mxu0 %v949_v5 }
 0x106   : > { %v381_v37 = vpop.f32.mrb[0].mxu0 }
 0x107   : > { %v382_v38 = vadd.f32 %v381_v37, %v313_v35  ;;  %v383_v39 = vpop.f32.mrb[1].mxu0 }
 0x108   : > { %v384_v40 = vadd.f32 %v383_v39, %v317_v36  ;;  %v385_v41 = vpop.f32.mrb[2].mxu0 }
 0x109   : > { %v386_v42 = vadd.f32 %v385_v41, %v313_v35  ;;  %v387_v43 = vpop.f32.mrb[3].mxu0  ;;  %v400_v45 = vmax.f32 %v382_v38, 0.0 }
 0x10a   : > { %v388_v44 = vadd.f32 %v387_v43, %v317_v36  ;;  %v401_v47 = vmax.f32 %v384_v40, 0.0 }
 0x10b   : > { %v402_v46 = vmax.f32 %v386_v42, 0.0 }
 0x10c   : > { %v403_v48 = vmax.f32 %v388_v44, 0.0 }
 0x10d   : > { %v408_v49 = vpack.c.bf16 %v402_v46, %v400_v45 }
 0x10e   : > { %v391_v50 = vpop.f32.mrb[4].mxu0  ;;  %v409_v51 = vpack.c.bf16 %v403_v48, %v401_v47 }
 0x10f   : > { %v392_v52 = vadd.f32 %v391_v50, %v313_v35  ;;  %v393_v53 = vpop.f32.mrb[5].mxu0 }
 0x110   : > { %v394_v54 = vadd.f32 %v393_v53, %v317_v36  ;;  %v395_v55 = vpop.f32.mrb[6].mxu0  ;;  %579 = vmatprep.mubr.bf16.mxu1 %v409_v51 }
 0x111   : > { %v396_v56 = vadd.f32 %v395_v55, %v313_v35  ;;  %v397_v57 = vpop.f32.mrb[7].mxu0  ;;  %580 = vmatmul.mubr.bf16.vlgmr.msra.gmra.mrb[0].mxu1 %v408_v49  ;;  %v404_v59 = vmax.f32 %v392_v52, 0.0 }
 0x112   : > { %v398_v58 = vadd.f32 %v397_v57, %v317_v36  ;;  %v405_v61 = vmax.f32 %v394_v54, 0.0 }
 0x113   : > { %v406_v60 = vmax.f32 %v396_v56, 0.0 }
 0x114   : > { %v407_v62 = vmax.f32 %v398_v58, 0.0 }
 0x115   : > { %v410_v63 = vpack.c.bf16 %v406_v60, %v404_v59 }
 0x116   : > { %v411_v0 = vpack.c.bf16 %v407_v62, %v405_v61 }
 0x118   : > { %587 = vmatprep.mubr.bf16.mxu1 %v411_v0 }
 0x119   : > { %588 = vmatmul.mubr.bf16.gmra.mrb[4].mxu1 %v410_v63 }
 0x1e4   : > { %v856_v6 = vpop.f32.mrb[0].mxu1 }
 0x1e5   : > { %v857_v8 = vpop.f32.mrb[1].mxu1 }
 0x1e6   : > { %v858_v9 = vadd.f32 %v857_v8, %v856_v6  ;;  %v859_v10 = vpop.f32.mrb[2].mxu1 }
 0x1e7   : > { %v860_v11 = vpop.f32.mrb[3].mxu1 }
 0x1e8   : > { %v582_v12 = vadd.f32 %v858_v9, %v812_v7  ;;  %v861_v13 = vadd.f32 %v860_v11, %v859_v10 }
 0x1ea   : > { %v585_v14 = vadd.f32 %v861_v13, %v812_v7  ;;  %v596_v15 = vmax.f32 %v582_v12, 0.0 }
 0x1ec   : > { %v597_v16 = vmax.f32 %v585_v14, 0.0  ;;  %v862_v17 = vpop.f32.mrb[4].mxu1 }
 0x1ed   : > { %v863_v18 = vpop.f32.mrb[5].mxu1 }
 0x1ee   : > { %v864_v19 = vadd.f32 %v863_v18, %v862_v17  ;;  %v865_v20 = vpop.f32.mrb[6].mxu1  ;;  %v600_v21 = vpack.c.bf16 %v597_v16, %v596_v15 }
 0x1ef   : > { %v866_v22 = vpop.f32.mrb[7].mxu1 }
 0x1f0   : > { %v590_v23 = vadd.f32 %v864_v19, %v812_v7  ;;  %v867_v24 = vadd.f32 %v866_v22, %v865_v20  ;;  %894 = vmatprep.mubr.bf16.mxu0 %v600_v21 }
 0x1f2   : > { %v593_v25 = vadd.f32 %v867_v24, %v812_v7  ;;  %v598_v26 = vmax.f32 %v590_v23, 0.0 }
 0x1f4   : > { %v599_v27 = vmax.f32 %v593_v25, 0.0 }
 0x1f6   : > { %v601_v28 = vpack.c.bf16 %v599_v27, %v598_v26 }
 0x1f8   : > { %895 = vmatmul.mubr.bf16.vlgmr.msra.gmra.mrb[8].mxu0 %v601_v28 }
 0x2cb   : > { %v896_v30 = vpop.f32.mrb[8].mxu0 }
 0x2cc   : > { %v707_v31 = vpop.f32.mrb[9].mxu0  ;;  %v716_v36 = vadd.f32 %v896_v30, %v829_v29 }
 0x2cd   : > { %v708_v32 = vadd.f32 %v829_v29, %v707_v31  ;;  %v897_v33 = vpop.f32.mrb[10].mxu0 }
 0x2ce   : > { %v710_v34 = vpop.f32.mrb[11].mxu0  ;;  %v719_v37 = vadd.f32 %v897_v33, %v829_v29  ;;  %725 = vst.msk [vmem:[%s295_s15 + $0x10] sm:$0xff] %vm722_vm1, %v716_v36 }
 0x2cf   : > { %723 = vst.msk [vmem:[%s295_s15] sm:$0xff] %vm722_vm1, %v708_v32  ;;  %v711_v35 = vadd.f32 %v829_v29, %v710_v34 }
 0x2d0   : > { %726 = vst.msk [vmem:[%s295_s15 + $0x18] sm:$0xff] %vm722_vm1, %v719_v37 }
 0x2d1   : > { %724 = vst.msk [vmem:[%s295_s15 + $0x8] sm:$0xff] %vm722_vm1, %v711_v35 }
 0x2d2 PF: > { %s18_s24 = sadd.s32 1, %s988_s24  }
 0x2d3   : > { %p15_p3 = scmp.ge.s32.totalorder %s18_s24, 4  }
 0x2d5   :  { %17 = sbr.rel (!%p15_p3) target bundleno = 1 (0x1), region = 83 }
 0x2dc   :  { %749 = vsyncpa [#allocation3], 1 }
 0x2dd   :  { %751 = vsyncpa [#allocation3 + $0x1], 1 }

</bundles_post_ra>
